<compile_context>
chip_gen: v5e
topology: v5e:2x2
jax: 0.10.0
libtpu: 0.0.40
codegen_flags: <defaults>
</compile_context>

<pallas_src>
import jax
import jax.numpy as jnp
from jax.experimental import pallas as pl
from jax.experimental.pallas import tpu as pltpu

EPS = 1e-5

# Set to jnp.bfloat16 on v6e/v7x for ~2-3x MXU throughput (accumulation stays
# f32 via preferred_element_type); keep f32 here so the 1e-4 self-test passes.
MXU_DTYPE = jnp.float32


def _mxu(a):
    return a if a.dtype == MXU_DTYPE else a.astype(MXU_DTYPE)


def _layernorm(x, gamma, beta):
    mu = jnp.mean(x, axis=-1, keepdims=True)
    var = jnp.mean((x - mu) ** 2, axis=-1, keepdims=True)
    return (x - mu) * jax.lax.rsqrt(var + EPS) * gamma + beta


def graph_refiner_kernel(
    inp_ref,    # (N, D)      inputs, this batch element
    n_ref,      # (N, D)      node features
    inc_ref,    # (N, N)      incidence / adjacency logits input
    W_ref,      # (5D, D)     packed: [wx ; w1 (3D rows) ; w2]
    V_ref,      # (15, D)     packed row vectors (biases / LN params / proj_s bias)
    pred_ref,   # (1, N*N)    new adjacency (lane-dense)
    nout_ref,   # (N, D)      new node features
):
    N, D = n_ref.shape

    # strip width along the second adjacency axis (bounds live VMEM to ~N*TJ*D)
    if N <= 128 or N % 128 != 0:
        TJ = N   # TODO(synk): pick a divisor strip width for ragged N > 128
    else:
        TJ = 128
    num_strips = N // TJ

    n = n_ref[...]
    inp = inp_ref[...]

    # ---- packed parameters (static slices: zero cost) ----
    wx = W_ref[0:D, :]
    w2 = W_ref[4 * D:5 * D, :]

    bx   = V_ref[0:1, :]
    wi   = V_ref[1:2, :]
    bi   = V_ref[2:3, :]
    ws   = V_ref[3:4, :]
    b1   = V_ref[4:5, :]
    b2   = V_ref[5:6, :]
    g_n  = V_ref[6:7, :]
    b_n  = V_ref[7:8, :]
    g_pa = V_ref[8:9, :]
    g_pb = V_ref[9:10, :]
    g_pc = V_ref[10:11, :]
    b_pa = V_ref[11:12, :]
    b_pb = V_ref[12:13, :]
    b_pc = V_ref[13:14, :]
    bs   = V_ref[14:15, :][:, :1]          # (1, 1) proj_s scalar bias

    # ---- MLPAdjacency ----
    x = jnp.dot(_mxu(n), _mxu(wx), preferred_element_type=jnp.float32) + bx   # (N, D)

    adj_cols = []
    for js in range(num_strips):
        j0 = js * TJ
        inc_strip = inc_ref[:, j0:j0 + TJ]                         # (N, TJ)
        x_j = x[j0:j0 + TJ, :]                                      # (TJ, D)
        inc_emb = inc_strip[:, :, None] * wi + bi                   # (N, TJ, D)
        s = jnp.maximum(x[:, None, :] + x_j[None, :, :] + inc_emb, 0.0)
        # proj_s: Linear(D -> 1) as a lane reduction.
        # TODO(synk): if the bundle dump shows the XLU as the binding slot,
        # move this reduction to the MXU via dot(s.reshape(-1, D), ws.T).
        logits = jnp.sum(s * ws, axis=-1) + bs                      # (N, TJ)
        adj_cols.append(jax.nn.sigmoid(logits))
    adj = adj_cols[0] if num_strips == 1 else jnp.concatenate(adj_cols, axis=1)

    # ---- updates[n,d] = sum_e adj[e,n] * n[e,d]  (no explicit transpose) ----
    updates = jax.lax.dot_general(
        _mxu(adj), _mxu(n),
        dimension_numbers=(((0,), (0,)), ((), ())),
        preferred_element_type=jnp.float32)                         # (N, D)

    # ---- pre-LayerNorm over the virtual concat [inp | n | updates] (width 3D),
    #      computed chunk-wise so no 3D-lane concat is materialized ----
    inv_D3 = 1.0 / (3.0 * D)
    row_sum = (jnp.sum(inp, axis=-1, keepdims=True)
               + jnp.sum(n, axis=-1, keepdims=True)
               + jnp.sum(updates, axis=-1, keepdims=True))
    mu = row_sum * inv_D3
    ca = inp - mu
    cb = n - mu
    cc = updates - mu
    var = (jnp.sum(ca * ca, axis=-1, keepdims=True)
           + jnp.sum(cb * cb, axis=-1, keepdims=True)
           + jnp.sum(cc * cc, axis=-1, keepdims=True)) * inv_D3
    rstd = jax.lax.rsqrt(var + EPS)
    pa = ca * rstd * g_pa + b_pa
    pb = cb * rstd * g_pb + b_pb
    pc = cc * rstd * g_pc + b_pc

    # ---- DeepSet phi MLP: Linear(3D -> D) -> ReLU -> Linear(D -> D) ----
    if D % 128 == 0:
        # fused (N, 3D) x (3D, D): one MXU push with K = 3D
        w1 = W_ref[D:4 * D, :]
        p_cat = jnp.concatenate([pa, pb, pc], axis=-1)
        h = jnp.dot(_mxu(p_cat), _mxu(w1), preferred_element_type=jnp.float32) + b1
    else:
        # 3D not a lane multiple: keep the 3-way DxD split
        w1a = W_ref[1 * D:2 * D, :]
        w1b = W_ref[2 * D:3 * D, :]
        w1c = W_ref[3 * D:4 * D, :]
        h = (jnp.dot(_mxu(pa), _mxu(w1a), preferred_element_type=jnp.float32)
             + jnp.dot(_mxu(pb), _mxu(w1b), preferred_element_type=jnp.float32)
             + jnp.dot(_mxu(pc), _mxu(w1c), preferred_element_type=jnp.float32)
             + b1)
    h = jnp.maximum(h, 0.0)
    h = jnp.dot(_mxu(h), _mxu(w2), preferred_element_type=jnp.float32) + b2

    # ---- residual + post-LayerNorm ----
    y = n + h
    mu2 = jnp.mean(y, axis=-1, keepdims=True)
    yc = y - mu2
    var2 = jnp.mean(yc * yc, axis=-1, keepdims=True)
    n_new = yc * jax.lax.rsqrt(var2 + EPS) * g_n + b_n

    # ---- single, lane-dense store per output block ----
    pred_ref[...] = adj.reshape(1, N * N)
    nout_ref[...] = n_new.astype(nout_ref.dtype)


def pack_params(params):
    """Pack per-layer weights into two kernel operands.  Run ONCE at init."""
    (wx, bx, wi, bi, ws, bs, g_pre, b_pre, w1, b1, w2, b2, g_n, b_n) = params
    D = wx.shape[0]
    # [wx ; w1 (3D rows) ; w2] -> (5D, D)
    W = jnp.concatenate([wx, w1, w2], axis=0).astype(jnp.float32)
    # all (1, D) row vectors + LN params + proj_s scalar bias -> (15, D)
    V = jnp.concatenate([
        bx, wi, bi, ws, b1, b2, g_n, b_n,
        g_pre[:, 0:D], g_pre[:, D:2 * D], g_pre[:, 2 * D:3 * D],
        b_pre[:, 0:D], b_pre[:, D:2 * D], b_pre[:, 2 * D:3 * D],
        jnp.full((1, D), bs[0, 0], jnp.float32),
    ], axis=0).astype(jnp.float32)
    return W, V


def graph_refiner_forward(inputs, n_t, i_t, W, V):
    B, N, D = n_t.shape
    TJ = N if (N <= 128 or N % 128 != 0) else 128

    # advisory cost estimate for the XLA scheduler
    flops = B * (2 * N * D * D          # proj_x
                 + 8 * N * N * D        # inc_emb / s / relu / proj_s
                 + 2 * N * N * D        # updates matmul
                 + 2 * N * 3 * D * D    # DeepSet layer 1
                 + 2 * N * D * D        # DeepSet layer 2
                 + 24 * N * D)          # LayerNorms / residual
    transcendentals = B * (N * N + 2 * N)
    bytes_accessed = 4 * (2 * B * N * D + B * N * N       # inputs
                          + 5 * D * D + 15 * D            # params
                          + B * N * N + B * N * D)        # outputs

    # bound the live VMEM set (per-batch slabs + strip intermediates + params),
    # with headroom for double buffering; capped at v7x physical VMEM.
    per_step = 4 * (8 * N * D + 2 * N * N + 3 * N * TJ * D + 5 * D * D + 15 * D)
    vmem_limit = int(min(64 * 1024 * 1024, max(4 * 1024 * 1024, 4 * per_step)))

    grid_spec = pltpu.PrefetchScalarGridSpec(
        num_scalar_prefetch=0,
        grid=(B,),
        in_specs=[
            pl.BlockSpec((None, N, D), lambda b: (b, 0, 0)),   # inputs
            pl.BlockSpec((None, N, D), lambda b: (b, 0, 0)),   # n_t
            pl.BlockSpec((None, N, N), lambda b: (b, 0, 0)),   # i_t
            pl.BlockSpec((5 * D, D), lambda b: (0, 0)),        # W (constant index: fetched once)
            pl.BlockSpec((15, D), lambda b: (0, 0)),           # V
        ],
        out_specs=(
            pl.BlockSpec((None, 1, N * N), lambda b: (b, 0, 0)),   # pred, lane-dense
            pl.BlockSpec((None, N, D), lambda b: (b, 0, 0)),       # n_new
        ),
    )

    pred_flat, n_new = pl.pallas_call(
        graph_refiner_kernel,
        out_shape=(
            jax.ShapeDtypeStruct((B, 1, N * N), jnp.float32),
            jax.ShapeDtypeStruct((B, N, D), jnp.float32),
        ),
        grid_spec=grid_spec,
        compiler_params=pltpu.CompilerParams(
            dimension_semantics=("parallel",),
            vmem_limit_bytes=vmem_limit,
        ),
        cost_estimate=pl.CostEstimate(
            flops=flops,
            transcendentals=transcendentals,
            bytes_accessed=bytes_accessed,
        ),
    )(inputs, n_t, i_t, W, V)

    pred = pred_flat.reshape(B, N, N)   # layout plumbing only, done in the wrapper
    # Module returns (pred, n_t, i_t) where pred and the new i_t are the same tensor.
    return pred, n_new, pred


def graph_refiner_reference(inputs, n_t, i_t, params):
    (wx, bx, wi, bi, ws, bs, g_pre, b_pre, w1, b1, w2, b2, g_n, b_n) = params
    x = n_t @ wx + bx                                           # (B, N, D)
    inc_emb = i_t[..., None] * wi + bi                          # (B, N, N, D)
    s = jnp.maximum(x[:, None, :, :] + x[:, :, None, :] + inc_emb, 0.0)
    adj = jax.nn.sigmoid(jnp.sum(s * ws, axis=-1) + bs[0, 0])   # (B, N, N)
    updates = jnp.einsum("ben,bed->bnd", adj, n_t)
    cat = jnp.concatenate([inputs, n_t, updates], axis=-1)
    pre = _layernorm(cat, g_pre, b_pre)
    h = jnp.maximum(pre @ w1 + b1, 0.0) @ w2 + b2
    n_new = _layernorm(n_t + h, g_n, b_n)
    return adj, n_new, adj


def make_params(key, D):
    D3 = 3 * D
    keys = jax.random.split(key, 8)

    def lin(k, fan_in, shape):
        return jax.random.uniform(k, shape, jnp.float32,
                                  -1.0 / jnp.sqrt(fan_in), 1.0 / jnp.sqrt(fan_in))

    wx = lin(keys[0], D, (D, D))
    bx = lin(keys[1], D, (1, D))
    wi = lin(keys[2], 1, (1, D))
    bi = lin(keys[2], 1, (1, D)) * 0.5
    ws = lin(keys[3], D, (1, D))
    bs = lin(keys[3], D, (1, 1)) * 0.5
    g_pre = jnp.ones((1, D3), jnp.float32)
    b_pre = jnp.zeros((1, D3), jnp.float32)
    w1 = lin(keys[4], D3, (D3, D))
    b1 = lin(keys[5], D3, (1, D))
    w2 = lin(keys[6], D, (D, D))
    b2 = lin(keys[7], D, (1, D))
    g_n = jnp.ones((1, D), jnp.float32)
    b_n = jnp.zeros((1, D), jnp.float32)
    return (wx, bx, wi, bi, ws, bs, g_pre, b_pre, w1, b1, w2, b2, g_n, b_n)


if __name__ == "__main__":
    B, N, D = 2, 8, 32
    key = jax.random.PRNGKey(0)
    k1, k2, k3, kp = jax.random.split(key, 4)

    inputs = jax.random.normal(k1, (B, N, D), jnp.float32)
    n_t = jax.random.normal(k2, (B, N, D), jnp.float32)
    i_t = jax.random.normal(k3, (B, N, N), jnp.float32)
    params = make_params(kp, D)

    W, V = pack_params(params)            # packed once, reused every step
    fwd = jax.jit(graph_refiner_forward)

    pred, n_new, i_new = fwd(inputs, n_t, i_t, W, V)
    jax.block_until_ready((pred, n_new, i_new))

    pred_r, n_r, _ = graph_refiner_reference(inputs, n_t, i_t, params)
    assert jnp.allclose(pred, pred_r, atol=1e-4, rtol=1e-4), "pred mismatch"
    assert jnp.allclose(n_new, n_r, atol=1e-4, rtol=1e-4), "n_t mismatch"

    print("KERNEL_OK")
</pallas_src>

<mosaic_0001>
module attributes {stable_mosaic.version = 11 : i64} {
  func.func @graph_refiner_kernel(%arg0: i32, %arg1: memref<1x8x32xf32, #tpu.memory_space<vmem>>, %arg2: memref<1x8x32xf32, #tpu.memory_space<vmem>>, %arg3: memref<1x8x8xf32, #tpu.memory_space<vmem>>, %arg4: memref<160x32xf32, #tpu.memory_space<vmem>>, %arg5: memref<15x32xf32, #tpu.memory_space<vmem>>, %arg6: memref<1x1x64xf32, #tpu.memory_space<vmem>>, %arg7: memref<1x8x32xf32, #tpu.memory_space<vmem>>) attributes {dimension_semantics = [#tpu.dimension_semantics<parallel>], iteration_bounds = array<i64: 2>, scalar_prefetch = 0 : i64, scratch_operands = 0 : i64, tpu.core_type = #tpu.core_type<tc>, window_params = [{transform_indices = @transform_0, window_bounds = array<i64: 1, 8, 32>}, {transform_indices = @transform_1, window_bounds = array<i64: 1, 8, 32>}, {transform_indices = @transform_2, window_bounds = array<i64: 1, 8, 8>}, {pipeline_mode = #tpu.pipeline_mode<synchronous>, transform_indices = @transform_3, window_bounds = array<i64: 160, 32>}, {pipeline_mode = #tpu.pipeline_mode<synchronous>, transform_indices = @transform_4, window_bounds = array<i64: 15, 32>}, {transform_indices = @transform_5, window_bounds = array<i64: 1, 1, 64>}, {transform_indices = @transform_6, window_bounds = array<i64: 1, 8, 32>}]} {
    %c0 = arith.constant 0 : index
    %c0_0 = arith.constant 0 : index
    %c0_1 = arith.constant 0 : index
    %0 = vector.load %arg2[%c0, %c0_0, %c0_1] : memref<1x8x32xf32, #tpu.memory_space<vmem>>, vector<1x8x32xf32>
    %1 = vector.shape_cast %0 : vector<1x8x32xf32> to vector<8x32xf32>
    %c0_2 = arith.constant 0 : index
    %c0_3 = arith.constant 0 : index
    %c0_4 = arith.constant 0 : index
    %2 = vector.load %arg1[%c0_2, %c0_3, %c0_4] : memref<1x8x32xf32, #tpu.memory_space<vmem>>, vector<1x8x32xf32>
    %3 = vector.shape_cast %2 : vector<1x8x32xf32> to vector<8x32xf32>
    %c0_5 = arith.constant 0 : index
    %c0_6 = arith.constant 0 : index
    %4 = vector.load %arg4[%c0_5, %c0_6] : memref<160x32xf32, #tpu.memory_space<vmem>>, vector<32x32xf32>
    %c128 = arith.constant 128 : index
    %c0_7 = arith.constant 0 : index
    %5 = vector.load %arg4[%c128, %c0_7] : memref<160x32xf32, #tpu.memory_space<vmem>>, vector<32x32xf32>
    %c0_8 = arith.constant 0 : index
    %c0_9 = arith.constant 0 : index
    %6 = vector.load %arg5[%c0_8, %c0_9] : memref<15x32xf32, #tpu.memory_space<vmem>>, vector<1x32xf32>
    %c1 = arith.constant 1 : index
    %c0_10 = arith.constant 0 : index
    %7 = vector.load %arg5[%c1, %c0_10] : memref<15x32xf32, #tpu.memory_space<vmem>>, vector<1x32xf32>
    %c2 = arith.constant 2 : index
    %c0_11 = arith.constant 0 : index
    %8 = vector.load %arg5[%c2, %c0_11] : memref<15x32xf32, #tpu.memory_space<vmem>>, vector<1x32xf32>
    %c3 = arith.constant 3 : index
    %c0_12 = arith.constant 0 : index
    %9 = vector.load %arg5[%c3, %c0_12] : memref<15x32xf32, #tpu.memory_space<vmem>>, vector<1x32xf32>
    %c4 = arith.constant 4 : index
    %c0_13 = arith.constant 0 : index
    %10 = vector.load %arg5[%c4, %c0_13] : memref<15x32xf32, #tpu.memory_space<vmem>>, vector<1x32xf32>
    %c5 = arith.constant 5 : index
    %c0_14 = arith.constant 0 : index
    %11 = vector.load %arg5[%c5, %c0_14] : memref<15x32xf32, #tpu.memory_space<vmem>>, vector<1x32xf32>
    %c6 = arith.constant 6 : index
    %c0_15 = arith.constant 0 : index
    %12 = vector.load %arg5[%c6, %c0_15] : memref<15x32xf32, #tpu.memory_space<vmem>>, vector<1x32xf32>
    %c7 = arith.constant 7 : index
    %c0_16 = arith.constant 0 : index
    %13 = vector.load %arg5[%c7, %c0_16] : memref<15x32xf32, #tpu.memory_space<vmem>>, vector<1x32xf32>
    %c8 = arith.constant 8 : index
    %c0_17 = arith.constant 0 : index
    %14 = vector.load %arg5[%c8, %c0_17] : memref<15x32xf32, #tpu.memory_space<vmem>>, vector<1x32xf32>
    %c9 = arith.constant 9 : index
    %c0_18 = arith.constant 0 : index
    %15 = vector.load %arg5[%c9, %c0_18] : memref<15x32xf32, #tpu.memory_space<vmem>>, vector<1x32xf32>
    %c10 = arith.constant 10 : index
    %c0_19 = arith.constant 0 : index
    %16 = vector.load %arg5[%c10, %c0_19] : memref<15x32xf32, #tpu.memory_space<vmem>>, vector<1x32xf32>
    %c11 = arith.constant 11 : index
    %c0_20 = arith.constant 0 : index
    %17 = vector.load %arg5[%c11, %c0_20] : memref<15x32xf32, #tpu.memory_space<vmem>>, vector<1x32xf32>
    %c12 = arith.constant 12 : index
    %c0_21 = arith.constant 0 : index
    %18 = vector.load %arg5[%c12, %c0_21] : memref<15x32xf32, #tpu.memory_space<vmem>>, vector<1x32xf32>
    %c13 = arith.constant 13 : index
    %c0_22 = arith.constant 0 : index
    %19 = vector.load %arg5[%c13, %c0_22] : memref<15x32xf32, #tpu.memory_space<vmem>>, vector<1x32xf32>
    %c14 = arith.constant 14 : index
    %c0_23 = arith.constant 0 : index
    %20 = vector.load %arg5[%c14, %c0_23] : memref<15x32xf32, #tpu.memory_space<vmem>>, vector<1x32xf32>
    %21 = vector.extract_strided_slice %20 {offsets = [0, 0], sizes = [1, 1], strides = [1, 1]} : vector<1x32xf32> to vector<1x1xf32>
    %cst = arith.constant dense<0.000000e+00> : vector<8x32xf32>
    %22 = tpu.matmul %1, %4, %cst {dimension_numbers = #tpu.dot_dimension_numbers<[1], [0], [0], [1], [0, 0, 1, 1], [], []>} : vector<8x32xf32>, vector<32x32xf32>, vector<8x32xf32> -> vector<8x32xf32>
    %23 = vector.broadcast %6 : vector<1x32xf32> to vector<8x32xf32>
    %24 = arith.addf %22, %23 : vector<8x32xf32>
    %c0_24 = arith.constant 0 : index
    %c0_25 = arith.constant 0 : index
    %c0_26 = arith.constant 0 : index
    %25 = vector.load %arg3[%c0_24, %c0_25, %c0_26] : memref<1x8x8xf32, #tpu.memory_space<vmem>>, vector<1x8x8xf32>
    %26 = vector.shape_cast %25 : vector<1x8x8xf32> to vector<8x8xf32>
    %27 = vector.shape_cast %26 : vector<8x8xf32> to vector<8x8x1xf32>
    %28 = vector.shape_cast %7 : vector<1x32xf32> to vector<1x1x32xf32>
    %29 = vector.broadcast %27 : vector<8x8x1xf32> to vector<8x8x32xf32>
    %30 = vector.broadcast %28 : vector<1x1x32xf32> to vector<8x8x32xf32>
    %31 = arith.mulf %29, %30 : vector<8x8x32xf32>
    %32 = vector.shape_cast %8 : vector<1x32xf32> to vector<1x1x32xf32>
    %33 = vector.broadcast %32 : vector<1x1x32xf32> to vector<8x8x32xf32>
    %34 = arith.addf %31, %33 : vector<8x8x32xf32>
    %35 = vector.shape_cast %24 : vector<8x32xf32> to vector<8x1x32xf32>
    %36 = vector.shape_cast %24 : vector<8x32xf32> to vector<1x8x32xf32>
    %37 = vector.broadcast %35 : vector<8x1x32xf32> to vector<8x8x32xf32>
    %38 = vector.broadcast %36 : vector<1x8x32xf32> to vector<8x8x32xf32>
    %39 = arith.addf %37, %38 : vector<8x8x32xf32>
    %40 = arith.addf %39, %34 : vector<8x8x32xf32>
    %cst_27 = arith.constant 0.000000e+00 : f32
    %41 = vector.broadcast %cst_27 : f32 to vector<8x8x32xf32>
    %42 = arith.maximumf %40, %41 : vector<8x8x32xf32>
    %43 = vector.shape_cast %9 : vector<1x32xf32> to vector<1x1x32xf32>
    %44 = vector.broadcast %43 : vector<1x1x32xf32> to vector<8x8x32xf32>
    %45 = arith.mulf %42, %44 : vector<8x8x32xf32>
    %cst_28 = arith.constant dense<0.000000e+00> : vector<8x8xf32>
    %46 = vector.multi_reduction <add>, %45, %cst_28 [2] : vector<8x8x32xf32> to vector<8x8xf32>
    %47 = vector.broadcast %21 : vector<1x1xf32> to vector<8x8xf32>
    %48 = arith.addf %46, %47 : vector<8x8xf32>
    %49 = arith.negf %48 : vector<8x8xf32>
    %50 = math.exp %49 : vector<8x8xf32>
    %cst_29 = arith.constant 1.000000e+00 : f32
    %51 = vector.broadcast %cst_29 : f32 to vector<8x8xf32>
    %52 = arith.addf %51, %50 : vector<8x8xf32>
    %53 = arith.divf %51, %52 : vector<8x8xf32>
    %cst_30 = arith.constant dense<0.000000e+00> : vector<8x32xf32>
    %54 = tpu.matmul %53, %1, %cst_30 {dimension_numbers = #tpu.dot_dimension_numbers<[0], [0], [1], [1], [0, 1, 1, 1], [], []>} : vector<8x8xf32>, vector<8x32xf32>, vector<8x32xf32> -> vector<8x32xf32>
    %cst_31 = arith.constant dense<0.000000e+00> : vector<8xf32>
    %55 = vector.multi_reduction <add>, %3, %cst_31 [1] : vector<8x32xf32> to vector<8xf32>
    %56 = vector.shape_cast %55 : vector<8xf32> to vector<8x1xf32>
    %cst_32 = arith.constant dense<0.000000e+00> : vector<8xf32>
    %57 = vector.multi_reduction <add>, %1, %cst_32 [1] : vector<8x32xf32> to vector<8xf32>
    %58 = vector.shape_cast %57 : vector<8xf32> to vector<8x1xf32>
    %59 = arith.addf %56, %58 : vector<8x1xf32>
    %cst_33 = arith.constant dense<0.000000e+00> : vector<8xf32>
    %60 = vector.multi_reduction <add>, %54, %cst_33 [1] : vector<8x32xf32> to vector<8xf32>
    %61 = vector.shape_cast %60 : vector<8xf32> to vector<8x1xf32>
    %62 = arith.addf %59, %61 : vector<8x1xf32>
    %cst_34 = arith.constant 0.010416667 : f32
    %63 = vector.broadcast %cst_34 : f32 to vector<8x1xf32>
    %64 = arith.mulf %62, %63 : vector<8x1xf32>
    %65 = vector.broadcast %64 : vector<8x1xf32> to vector<8x32xf32>
    %66 = arith.subf %3, %65 : vector<8x32xf32>
    %67 = vector.broadcast %64 : vector<8x1xf32> to vector<8x32xf32>
    %68 = arith.subf %1, %67 : vector<8x32xf32>
    %69 = vector.broadcast %64 : vector<8x1xf32> to vector<8x32xf32>
    %70 = arith.subf %54, %69 : vector<8x32xf32>
    %71 = arith.mulf %66, %66 : vector<8x32xf32>
    %cst_35 = arith.constant dense<0.000000e+00> : vector<8xf32>
    %72 = vector.multi_reduction <add>, %71, %cst_35 [1] : vector<8x32xf32> to vector<8xf32>
    %73 = vector.shape_cast %72 : vector<8xf32> to vector<8x1xf32>
    %74 = arith.mulf %68, %68 : vector<8x32xf32>
    %cst_36 = arith.constant dense<0.000000e+00> : vector<8xf32>
    %75 = vector.multi_reduction <add>, %74, %cst_36 [1] : vector<8x32xf32> to vector<8xf32>
    %76 = vector.shape_cast %75 : vector<8xf32> to vector<8x1xf32>
    %77 = arith.addf %73, %76 : vector<8x1xf32>
    %78 = arith.mulf %70, %70 : vector<8x32xf32>
    %cst_37 = arith.constant dense<0.000000e+00> : vector<8xf32>
    %79 = vector.multi_reduction <add>, %78, %cst_37 [1] : vector<8x32xf32> to vector<8xf32>
    %80 = vector.shape_cast %79 : vector<8xf32> to vector<8x1xf32>
    %81 = arith.addf %77, %80 : vector<8x1xf32>
    %cst_38 = arith.constant 0.010416667 : f32
    %82 = vector.broadcast %cst_38 : f32 to vector<8x1xf32>
    %83 = arith.mulf %81, %82 : vector<8x1xf32>
    %cst_39 = arith.constant 9.99999974E-6 : f32
    %84 = vector.broadcast %cst_39 : f32 to vector<8x1xf32>
    %85 = arith.addf %83, %84 : vector<8x1xf32>
    %86 = math.rsqrt %85 : vector<8x1xf32>
    %87 = vector.broadcast %86 : vector<8x1xf32> to vector<8x32xf32>
    %88 = arith.mulf %66, %87 : vector<8x32xf32>
    %89 = vector.broadcast %14 : vector<1x32xf32> to vector<8x32xf32>
    %90 = arith.mulf %88, %89 : vector<8x32xf32>
    %91 = vector.broadcast %17 : vector<1x32xf32> to vector<8x32xf32>
    %92 = arith.addf %90, %91 : vector<8x32xf32>
    %93 = vector.broadcast %86 : vector<8x1xf32> to vector<8x32xf32>
    %94 = arith.mulf %68, %93 : vector<8x32xf32>
    %95 = vector.broadcast %15 : vector<1x32xf32> to vector<8x32xf32>
    %96 = arith.mulf %94, %95 : vector<8x32xf32>
    %97 = vector.broadcast %18 : vector<1x32xf32> to vector<8x32xf32>
    %98 = arith.addf %96, %97 : vector<8x32xf32>
    %99 = vector.broadcast %86 : vector<8x1xf32> to vector<8x32xf32>
    %100 = arith.mulf %70, %99 : vector<8x32xf32>
    %101 = vector.broadcast %16 : vector<1x32xf32> to vector<8x32xf32>
    %102 = arith.mulf %100, %101 : vector<8x32xf32>
    %103 = vector.broadcast %19 : vector<1x32xf32> to vector<8x32xf32>
    %104 = arith.addf %102, %103 : vector<8x32xf32>
    %c32 = arith.constant 32 : index
    %c0_40 = arith.constant 0 : index
    %105 = vector.load %arg4[%c32, %c0_40] : memref<160x32xf32, #tpu.memory_space<vmem>>, vector<32x32xf32>
    %c64 = arith.constant 64 : index
    %c0_41 = arith.constant 0 : index
    %106 = vector.load %arg4[%c64, %c0_41] : memref<160x32xf32, #tpu.memory_space<vmem>>, vector<32x32xf32>
    %c96 = arith.constant 96 : index
    %c0_42 = arith.constant 0 : index
    %107 = vector.load %arg4[%c96, %c0_42] : memref<160x32xf32, #tpu.memory_space<vmem>>, vector<32x32xf32>
    %cst_43 = arith.constant dense<0.000000e+00> : vector<8x32xf32>
    %108 = tpu.matmul %92, %105, %cst_43 {dimension_numbers = #tpu.dot_dimension_numbers<[1], [0], [0], [1], [0, 0, 1, 1], [], []>} : vector<8x32xf32>, vector<32x32xf32>, vector<8x32xf32> -> vector<8x32xf32>
    %cst_44 = arith.constant dense<0.000000e+00> : vector<8x32xf32>
    %109 = tpu.matmul %98, %106, %cst_44 {dimension_numbers = #tpu.dot_dimension_numbers<[1], [0], [0], [1], [0, 0, 1, 1], [], []>} : vector<8x32xf32>, vector<32x32xf32>, vector<8x32xf32> -> vector<8x32xf32>
    %110 = arith.addf %108, %109 : vector<8x32xf32>
    %cst_45 = arith.constant dense<0.000000e+00> : vector<8x32xf32>
    %111 = tpu.matmul %104, %107, %cst_45 {dimension_numbers = #tpu.dot_dimension_numbers<[1], [0], [0], [1], [0, 0, 1, 1], [], []>} : vector<8x32xf32>, vector<32x32xf32>, vector<8x32xf32> -> vector<8x32xf32>
    %112 = arith.addf %110, %111 : vector<8x32xf32>
    %113 = vector.broadcast %10 : vector<1x32xf32> to vector<8x32xf32>
    %114 = arith.addf %112, %113 : vector<8x32xf32>
    %cst_46 = arith.constant 0.000000e+00 : f32
    %115 = vector.broadcast %cst_46 : f32 to vector<8x32xf32>
    %116 = arith.maximumf %114, %115 : vector<8x32xf32>
    %cst_47 = arith.constant dense<0.000000e+00> : vector<8x32xf32>
    %117 = tpu.matmul %116, %5, %cst_47 {dimension_numbers = #tpu.dot_dimension_numbers<[1], [0], [0], [1], [0, 0, 1, 1], [], []>} : vector<8x32xf32>, vector<32x32xf32>, vector<8x32xf32> -> vector<8x32xf32>
    %118 = vector.broadcast %11 : vector<1x32xf32> to vector<8x32xf32>
    %119 = arith.addf %117, %118 : vector<8x32xf32>
    %120 = arith.addf %1, %119 : vector<8x32xf32>
    %cst_48 = arith.constant dense<0.000000e+00> : vector<8xf32>
    %121 = vector.multi_reduction <add>, %120, %cst_48 [1] : vector<8x32xf32> to vector<8xf32>
    %122 = vector.shape_cast %121 : vector<8xf32> to vector<8x1xf32>
    %cst_49 = arith.constant 3.200000e+01 : f32
    %123 = vector.broadcast %cst_49 : f32 to vector<8x1xf32>
    %124 = arith.divf %122, %123 : vector<8x1xf32>
    %125 = vector.broadcast %124 : vector<8x1xf32> to vector<8x32xf32>
    %126 = arith.subf %120, %125 : vector<8x32xf32>
    %127 = arith.mulf %126, %126 : vector<8x32xf32>
    %cst_50 = arith.constant dense<0.000000e+00> : vector<8xf32>
    %128 = vector.multi_reduction <add>, %127, %cst_50 [1] : vector<8x32xf32> to vector<8xf32>
    %129 = vector.shape_cast %128 : vector<8xf32> to vector<8x1xf32>
    %cst_51 = arith.constant 3.200000e+01 : f32
    %130 = vector.broadcast %cst_51 : f32 to vector<8x1xf32>
    %131 = arith.divf %129, %130 : vector<8x1xf32>
    %cst_52 = arith.constant 9.99999974E-6 : f32
    %132 = vector.broadcast %cst_52 : f32 to vector<8x1xf32>
    %133 = arith.addf %131, %132 : vector<8x1xf32>
    %134 = math.rsqrt %133 : vector<8x1xf32>
    %135 = vector.broadcast %134 : vector<8x1xf32> to vector<8x32xf32>
    %136 = arith.mulf %126, %135 : vector<8x32xf32>
    %137 = vector.broadcast %12 : vector<1x32xf32> to vector<8x32xf32>
    %138 = arith.mulf %136, %137 : vector<8x32xf32>
    %139 = vector.broadcast %13 : vector<1x32xf32> to vector<8x32xf32>
    %140 = arith.addf %138, %139 : vector<8x32xf32>
    %141 = vector.shape_cast %53 : vector<8x8xf32> to vector<1x64xf32>
    %c0_53 = arith.constant 0 : index
    %c0_54 = arith.constant 0 : index
    %c0_55 = arith.constant 0 : index
    %142 = vector.load %arg6[%c0_53, %c0_54, %c0_55] : memref<1x1x64xf32, #tpu.memory_space<vmem>>, vector<1x1x64xf32>
    %143 = vector.shape_cast %142 : vector<1x1x64xf32> to vector<1x64xf32>
    %144 = vector.shape_cast %141 : vector<1x64xf32> to vector<1x1x64xf32>
    tpu.vector_store %arg6[%c0_53, %c0_54, %c0_55], %144 {strides = array<i32>} : memref<1x1x64xf32, #tpu.memory_space<vmem>>, vector<1x1x64xf32>,
    %c0_56 = arith.constant 0 : index
    %c0_57 = arith.constant 0 : index
    %c0_58 = arith.constant 0 : index
    %145 = vector.load %arg7[%c0_56, %c0_57, %c0_58] : memref<1x8x32xf32, #tpu.memory_space<vmem>>, vector<1x8x32xf32>
    %146 = vector.shape_cast %145 : vector<1x8x32xf32> to vector<8x32xf32>
    %147 = vector.shape_cast %140 : vector<8x32xf32> to vector<1x8x32xf32>
    tpu.vector_store %arg7[%c0_56, %c0_57, %c0_58], %147 {strides = array<i32>} : memref<1x8x32xf32, #tpu.memory_space<vmem>>, vector<1x8x32xf32>,
    return
  }
  func.func @transform_0(%arg0: i32) -> (i32, i32, i32) {
    %c0_i32 = arith.constant 0 : i32
    %c0_i32_0 = arith.constant 0 : i32
    %c0_i32_1 = arith.constant 0 : i32
    return %arg0, %c0_i32, %c0_i32_0 : i32, i32, i32
  }
  func.func @transform_1(%arg0: i32) -> (i32, i32, i32) {
    %c0_i32 = arith.constant 0 : i32
    %c0_i32_0 = arith.constant 0 : i32
    %c0_i32_1 = arith.constant 0 : i32
    return %arg0, %c0_i32, %c0_i32_0 : i32, i32, i32
  }
  func.func @transform_2(%arg0: i32) -> (i32, i32, i32) {
    %c0_i32 = arith.constant 0 : i32
    %c0_i32_0 = arith.constant 0 : i32
    %c0_i32_1 = arith.constant 0 : i32
    return %arg0, %c0_i32, %c0_i32_0 : i32, i32, i32
  }
  func.func @transform_3(%arg0: i32) -> (i32, i32) {
    %c0_i32 = arith.constant 0 : i32
    %c0_i32_0 = arith.constant 0 : i32
    %c0_i32_1 = arith.constant 0 : i32
    return %c0_i32, %c0_i32_0 : i32, i32
  }
  func.func @transform_4(%arg0: i32) -> (i32, i32) {
    %c0_i32 = arith.constant 0 : i32
    %c0_i32_0 = arith.constant 0 : i32
    %c0_i32_1 = arith.constant 0 : i32
    return %c0_i32, %c0_i32_0 : i32, i32
  }
  func.func @transform_5(%arg0: i32) -> (i32, i32, i32) {
    %c0_i32 = arith.constant 0 : i32
    %c0_i32_0 = arith.constant 0 : i32
    %c0_i32_1 = arith.constant 0 : i32
    return %arg0, %c0_i32, %c0_i32_0 : i32, i32, i32
  }
  func.func @transform_6(%arg0: i32) -> (i32, i32, i32) {
    %c0_i32 = arith.constant 0 : i32
    %c0_i32_0 = arith.constant 0 : i32
    %c0_i32_1 = arith.constant 0 : i32
    return %arg0, %c0_i32, %c0_i32_0 : i32, i32, i32
  }
}

</mosaic_0001>

<bundles_post_ra>
// kernel: graph_refiner_forward.1
= control target key start
LH: loop header
LB: loop body
LE: loop exit
PB: predicated region body
PF: predicated region fallthrough
CT: control target
= control target key end

     0   :  { %12 = vsyncpa [#allocation3], 0  ;;  %s1837_s0 = inlined_call_operand.vmem [shape: f32[2,8,32], index: 0, kind: input, shape index: {}]   ;;  %s1838_s1 = inlined_call_operand.vmem [shape: f32[2,8,32], index: 1, kind: input, shape index: {}]   ;;  %s1839_s2 = inlined_call_operand.vmem [shape: f32[2,8,8], index: 2, kind: input, shape index: {}]   ;;  %s1840_s3 = inlined_call_operand.vmem [shape: f32[160,32], index: 3, kind: input, shape index: {}]   ;;  %s1841_s4 = inlined_call_operand.vmem [shape: f32[15,32], index: 4, kind: input, shape index: {}]   ;;  %s1842_s5 = inlined_call_operand.vmem [shape: f32[2,1,64], index: 5, kind: output, shape index: {0}]   ;;  %s1843_s6 = inlined_call_operand.hbm [shape: f32[2,8,32], index: 6, kind: output, shape index: {1}]  }
   0x1   :  { %14 = vsyncpa [#allocation3 + $0x1], 0  ;;  %s1328_s21 = smov 0   ;;  %s1330_s22 = smov 0  }
   0x2   :  { %s1332_s23 = smov 0   ;;  %s1334_s24 = smov 0  }
   0x3 LB: > { %s1349_s25 = sadd.s32 4294967295, %s1290_s24   ;;  %s1104_s26 = sadd.s32 4294967294, %s1290_s24   ;;  %s1290_s24 = sphi %s1334_s24, %s1871_s24   ;;  %s1286_s23 = sphi %s1332_s23, %s1870_s23   ;;  %s1282_s22 = sphi %s1330_s22, %s1869_s22   ;;  %s1278_s21 = sphi %s1328_s21, %s1868_s21  }
   0x4   : > { %s1353_s27 = sadd.s32 1, %s1290_s24   ;;  %s173_s28 = sadd.s32 1, %s1286_s23 }
   0x5   : > { %s170_s29 = ssub.s32 %s1290_s24, %s1353_s27  ;;  %p183_p0 = scmp.ne.s32.totalorder %s1286_s23, %s1282_s22 }
   0x6   : > { %p171_p1 = scmp.eq.s32.totalorder %s170_s29, 0  ;;  %p184_p2 = scmp.eq.s32.totalorder %s1349_s25, 1 }
   0x7   : > { %p189_p3 = scmp.ne.s32.totalorder %s1282_s22, %s1278_s21  ;;  %p190_p4 = scmp.eq.s32.totalorder %s1104_s26, 1 }
   0x8   : > { %s1364_s30 = scalar_select %p171_p1, %s1286_s23, %s173_s28  }
   0x9   : > { %p1366_p5 = por %p184_p2, %p183_p0  ;;  %p1370_p6 = por %p190_p4, %p189_p3 }
   0xa   : > { %p1107_p7 = scmp.ge.s32.totalorder %s1290_s24, 1  ;;  %p235_p8 = scmp.lt.s32.totalorder %s1290_s24, 3 }
   0xc   : > { %p236_p9 = pnand %p1107_p7, %p235_p8 }
   0xd   : > { %p275_p10 = scmp.lt.s32.totalorder (!%p236_p9), %s1349_s25, 1  ;;  %s272_s16 = sand.u32 (!%p236_p9), 1, %s1282_s22  }
   0xe   : > { %239 = sbr.rel (%p236_p9) target bundleno = 1454 (0x5ae), region = 40  ;;  %s1108_s17 = sshll.u32 (!%p236_p9), %s272_s16, 3 }
   0xf   : > { %s1127_s19 = sshll.u32 (!%p236_p9), %s1349_s25, 3  ;;  %s274_s12 = scalar_lea.vmem (!%p236_p9), [#allocation2], %s1108_s17 }
  0x10   : > { %s1248_s17 = scalar_lea.hbm (!%p236_p9), %s1843_s6, 16 }
  0x13   : > { %v295_v0 = vld [vmem:[%s1840_s3 + $0x18] sm:$0xff]  ;;  %v294_v1 = vld [vmem:[%s1840_s3 + $0x10] sm:$0xff]  ;;  %v342_v2 = vlaneseq  ;;  %v293_v4 = vld [vmem:[%s1840_s3 + $0x8] sm:$0xff]  ;;  %s1388_s15 = scalar_select %p275_p10, %s1349_s25, 1  ;;  %vm316_vm0 = vcmask 261120   ;;  %vm678_vm13 = vcmask 1041409  }
  0x14   : > { %332 = vmatpush.msra.mxu0 %v295_v0  ;;  %v292_v5 = vld [vmem:[%s1840_s3] sm:$0xff]  ;;  %v314_v50 = vld [vmem:[%s1841_s4 + $0xe] sm:$0x1]  ;;  %s999_s25 = sshll.u32 %s274_s12, 4  ;;  %s1000_s25 = int_to_ptr.vmem [resolvable:$true] %s999_s25 }
  0x15   : > { %v343_v3 = vshrl.u32 %v342_v2, 7  ;;  %s1394_s18 = sshll.u32 %s1388_s15, 3  ;;  %v1412_v19 = vld [vmem:[%s1841_s4 + $0x1] ss:$0 sm:$0xff]  ;;  %v1178_v20 = vld [vmem:[%s1841_s4] ss:$0 sm:$0xff]  ;;  %1130 = vpush %v314_v50  ;;  %s289_s10 = scalar_lea.vmem %s1842_s5, %s1388_s15 }
  0x16   : > { %333 = vmatpush.msra.mxu0 %v294_v1  ;;  %s282_s26 = scalar_lea.vmem %s1838_s1, %s1394_s18  ;;  %s286_s9 = scalar_lea.vmem %s1839_s2, %s1394_s18  ;;  %v1420_v22 = vld [vmem:[%s1841_s4 + $0x2] ss:$0 sm:$0xff]  ;;  %v1179_v53 = vld [vmem:[%s1841_s4 + $0x3] ss:$0 sm:$0xff] }
  0x17   : > { %1174 = vset.pattern.permute.xlu1 %v343_v3  ;;  %1173 = vset.pattern.permute.xlu0 %v343_v3  ;;  %v1404_v6 = vld [vmem:[%s282_s26] sm:$0xff]  ;;  %s278_s13 = scalar_lea.vmem %s1837_s0, %s1394_s18  ;;  %s984_s15 = scalar_lea.sflag [#allocation3], %s272_s16 }
  0x18   : > { %334 = vmatpush.msra.mxu0 %v293_v4  ;;  %1175 = vset.pattern.permute.xlu2 %v343_v3  ;;  %v340_v7 = vld [vmem:[%s286_s9] sm:$0xff]  ;;  %s997_s9 = scalar_lea.hbm %s1843_s6, %s1127_s19 }
  0x19   : > { %744 = vmatpush.msra.mxu1 %v1404_v6  ;;  %v355_v8 = vperm.slane %v340_v7, 2  ;;  %v341_v9 = vperm.slane %v340_v7, 0  ;;  %v369_v10 = vperm.slane %v340_v7, 4  ;;  %v362_v11 = vperm.slane %v340_v7, 3 }
  0x1a   : > { %335 = vmatpush.msra.mxu0 %v292_v5  ;;  %v348_v12 = vperm.slane %v340_v7, 1  ;;  %v376_v13 = vperm.slane %v340_v7, 5  ;;  %v390_v14 = vperm.slane %v340_v7, 7  ;;  %v383_v15 = vperm.slane %v340_v7, 6 }
  0x1b   : > { %1112 = vmatmul.msk.f32.vlgmr.msra.gmra.mxu0 %vm316_vm0, %v1404_v6 }
  0x1f   : > { %360 = vperm.xlu1 %1174, %v355_v8   ;;  %346 = vperm.xlu0 %1173, %v341_v9  }
  0x20   : > { %374 = vperm.xlu2 %1175, %v369_v10  }
  0x27   : > { %367 = vperm.xlu1 %1174, %v362_v11   ;;  %353 = vperm.xlu0 %1173, %v348_v12  }
  0x28   : > { %381 = vperm.xlu2 %1175, %v376_v13  }
  0x2f   : > { %395 = vperm.xlu1 %1174, %v390_v14   ;;  %388 = vperm.xlu0 %1173, %v383_v15  }
  0x46   : > { %s1131_s28 = spop %1130 }
  0x7a   : > { %v375_v16 = vpop.permute.xlu2 %374 }
  0x7b   : > { %v402_v56 = vmul.f32 %v1412_v19, %v375_v16 }
  0x7d   : > { %v411_v8 = vadd.f32 %v1420_v22, %v402_v56 }
  0x82   : > { %v382_v21 = vpop.permute.xlu2 %381 }
  0x83   : > { %v403_v25 = vmul.f32 %v1412_v19, %v382_v21 }
  0x85   : > { %v412_v35 = vadd.f32 %v1420_v22, %v403_v25 }
  0x91   : > { %v361_v17 = vpop.permute.xlu1 %360  ;;  %v347_v18 = vpop.permute.xlu0 %346 }
  0x92   : > { %v398_v23 = vmul.f32 %v1412_v19, %v347_v18  ;;  %v400_v38 = vmul.f32 %v1412_v19, %v361_v17 }
  0x94   : > { %v407_v34 = vadd.f32 %v1420_v22, %v398_v23  ;;  %v409_v55 = vadd.f32 %v1420_v22, %v400_v38 }
  0x98   : > { %v337_v24 = vpop.f32.mrf.mxu0 }
  0x99   : > { %v1424_v26 = vadd.f32 %v1178_v20, %v337_v24  ;;  %v368_v27 = vpop.permute.xlu1 %367  ;;  %v354_v28 = vpop.permute.xlu0 %353 }
  0x9a   : > { %v401_v29 = vmul.f32 %v1412_v19, %v368_v27  ;;  %v399_v31 = vmul.f32 %v1412_v19, %v354_v28 }
  0x9b   : > { %v418_v30 = vrot.slane %v1424_v26, 3  ;;  %v416_v32 = vrot.slane %v1424_v26, 1  ;;  %v420_v33 = vrot.slane %v1424_v26, 5  ;;  %v421_v36 = vrot.slane %v1424_v26, 6 }
  0x9c   : > { %v423_v37 = vperm.slane %v1424_v26, 0  ;;  %v410_v42 = vadd.f32 %v1420_v22, %v401_v29  ;;  %v417_v44 = vrot.slane %v1424_v26, 2  ;;  %v419_v45 = vrot.slane %v1424_v26, 4 }
  0x9d   : > { %v426_v39 = vperm.slane %v418_v30, 0  ;;  %v424_v40 = vperm.slane %v416_v32, 0  ;;  %v428_v41 = vperm.slane %v420_v33, 0  ;;  %v408_v47 = vadd.f32 %v1420_v22, %v399_v31 }
  0x9e   : > { %v439_v43 = vadd.f32 %v423_v37, %v1424_v26  ;;  %v429_v51 = vperm.slane %v421_v36, 0  ;;  %v425_v54 = vperm.slane %v417_v44, 0  ;;  %v427_v63 = vperm.slane %v419_v45, 0 }
  0x9f   : > { %v442_v46 = vadd.f32 %v426_v39, %v1424_v26  ;;  %v440_v48 = vadd.f32 %v424_v40, %v1424_v26  ;;  %v444_v49 = vadd.f32 %v428_v41, %v1424_v26  ;;  %v422_v18 = vrot.slane %v1424_v26, 7 }
  0xa0   : > { %v447_v52 = vadd.f32 %v439_v43, %v407_v34  ;;  %v441_v62 = vadd.f32 %v425_v54, %v1424_v26  ;;  %v445_v4 = vadd.f32 %v429_v51, %v1424_v26  ;;  %v443_v15 = vadd.f32 %v427_v63, %v1424_v26 }
  0xa1   : > { %v450_v57 = vadd.f32 %v442_v46, %v410_v42  ;;  %v448_v58 = vadd.f32 %v440_v48, %v408_v47  ;;  %v389_v59 = vpop.permute.xlu0 %388  ;;  %v452_v0 = vadd.f32 %v444_v49, %v412_v35  ;;  %v396_v11 = vpop.permute.xlu1 %395  ;;  %v430_v29 = vperm.slane %v422_v18, 0 }
  0xa2   : > { %v404_v60 = vmul.f32 %v1412_v19, %v389_v59  ;;  %v455_v61 = vmax.f32 %v447_v52, 0.0  ;;  %v449_v7 = vadd.f32 %v441_v62, %v409_v55  ;;  %v405_v21 = vmul.f32 %v1412_v19, %v396_v11 }
  0xa3   : > { %v456_v1 = vmax.f32 %v448_v58, 0.0  ;;  %v458_v10 = vmax.f32 %v450_v57, 0.0  ;;  %v460_v17 = vmax.f32 %v452_v0, 0.0  ;;  %v451_v27 = vadd.f32 %v443_v15, %v411_v8 }
  0xa4   : > { %v413_v3 = vadd.f32 %v1420_v22, %v404_v60  ;;  %v464_v5 = vmul.f32 %v1179_v53, %v455_v61  ;;  %v457_v14 = vmax.f32 %v449_v7, 0.0  ;;  %v414_v30 = vadd.f32 %v1420_v22, %v405_v21 }
  0xa5   : > { %v465_v9 = vmul.f32 %v1179_v53, %v456_v1  ;;  %v467_v24 = vmul.f32 %v1179_v53, %v458_v10  ;;  %v469_v28 = vmul.f32 %v1179_v53, %v460_v17  ;;  %v459_v33 = vmax.f32 %v451_v27, 0.0 }
  0xa6   : > { %v453_v12 = vadd.f32 %v445_v4, %v413_v3  ;;  %v472_v13 = vsel %vm316_vm0, %v464_v5, 0.0  ;;  %v466_v20 = vmul.f32 %v1179_v53, %v457_v14  ;;  %v446_v35 = vadd.f32 %v430_v29, %v1424_v26 }
  0xa7   : > { %473 = vadd.xlane.f32.xlu2 %v472_v13  ;;  %v475_v16 = vsel %vm316_vm0, %v465_v9, 0.0  ;;  %v481_v31 = vsel %vm316_vm0, %v467_v24, 0.0  ;;  %v487_v34 = vsel %vm316_vm0, %v469_v28, 0.0  ;;  %v468_v37 = vmul.f32 %v1179_v53, %v459_v33 }
  0xa8   : > { %476 = vadd.xlane.f32.xlu0 %v475_v16  ;;  %v478_v23 = vsel %vm316_vm0, %v466_v20, 0.0  ;;  %v461_v25 = vmax.f32 %v453_v12, 0.0  ;;  %v454_v19 = vadd.f32 %v446_v35, %v414_v30  ;;  %v1470_v41 = vstv %s1131_s28 }
  0xa9   : > { %479 = vadd.xlane.f32.xlu1 %v478_v23  ;;  %v484_v38 = vsel %vm316_vm0, %v468_v37, 0.0  ;;  %v1500_v13 = vand.u32 127, %v342_v2 }
  0xaa   : > { %v470_v32 = vmul.f32 %v1179_v53, %v461_v25  ;;  %v462_v39 = vmax.f32 %v454_v19, 0.0 }
  0xab   : > { %v1514_v27 = vadd.s32 4294967288, %v1500_v13 }
  0xac   : > { %v490_v36 = vsel %vm316_vm0, %v470_v32, 0.0  ;;  %v471_v22 = vmul.f32 %v1179_v53, %v462_v39 }
  0xae   : > { %v493_v40 = vsel %vm316_vm0, %v471_v22, 0.0 }
  0xaf   : > { %482 = vadd.xlane.f32.xlu2 %v481_v31 }
  0xb0   : > { %488 = vadd.xlane.f32.xlu0 %v487_v34 }
  0xb1   : > { %491 = vadd.xlane.f32.xlu1 %v490_v36 }
  0xb7   : > { %485 = vadd.xlane.f32.xlu2 %v484_v38 }
  0xbf   : > { %494 = vadd.xlane.f32.xlu2 %v493_v40 }
 0x11a   : > { %v474_v42 = vpop.xlane.xlu2 %473 }
 0x11b   : > { %v500_v26 = vadd.f32 %v1470_v41, %v474_v42  ;;  %v477_v43 = vpop.xlane.xlu0 %476 }
 0x11c   : > { %v501_v44 = vadd.f32 %v1470_v41, %v477_v43  ;;  %v480_v46 = vpop.xlane.xlu1 %479 }
 0x11d   : > { %v1113_v45 = vmul.f32 -1.442695, %v500_v26  ;;  %v502_v48 = vadd.f32 %v1470_v41, %v480_v46 }
 0x11e   : > { %v1114_v47 = vmul.f32 -1.442695, %v501_v44 }
 0x11f   : > { %1190 = vpow2.f32 %v1113_v45  ;;  %v1115_v49 = vmul.f32 -1.442695, %v502_v48 }
 0x120   : > { %1192 = vpow2.f32 %v1114_v47 }
 0x121   : > { %1194 = vpow2.f32 %v1115_v49 }
 0x122   : > { %v483_v50 = vpop.xlane.xlu2 %482 }
 0x123   : > { %v503_v51 = vadd.f32 %v1470_v41, %v483_v50  ;;  %v489_v52 = vpop.xlane.xlu0 %488 }
 0x124   : > { %v505_v53 = vadd.f32 %v1470_v41, %v489_v52  ;;  %v492_v58 = vpop.xlane.xlu1 %491 }
 0x125   : > { %v1191_v54 = vpop.eup %1190  ;;  %v1116_v55 = vmul.f32 -1.442695, %v503_v51  ;;  %v506_v60 = vadd.f32 %v1470_v41, %v492_v58  ;;  %v1581_v58 = vadd.s32 4294967280, %v1500_v13 }
 0x126   : > { %v1193_v56 = vpop.eup %1192  ;;  %v1477_v57 = vadd.f32 1.0, %v1191_v54  ;;  %v1118_v61 = vmul.f32 -1.442695, %v505_v53 }
 0x127   : > { %v1479_v59 = vadd.f32 1.0, %v1193_v56  ;;  %1196 = vpow2.f32 %v1116_v55  ;;  %v1195_v62 = vpop.eup %1194  ;;  %v1119_v0 = vmul.f32 -1.442695, %v506_v60  ;;  %v1584_v60 = vadd.s32 4294967272, %v1500_v13 }
 0x128   : > { %1198 = vrcp.f32 %v1477_v57  ;;  %v1484_v63 = vadd.f32 1.0, %v1195_v62  ;;  %v549_v25 = vand.u32 2147483647, %v1477_v57  ;;  %v551_v2 = vand.u32 2147483648, %v1477_v57 }
 0x129   : > { %1200 = vrcp.f32 %v1479_v59  ;;  %v564_v28 = vand.u32 2147483647, %v1479_v59  ;;  %v566_v31 = vand.u32 2147483648, %v1479_v59  ;;  %vm545_vm1 = vweird.f32 %v1477_v57 }
 0x12a   : > { %v486_v1 = vpop.xlane.xlu2 %485  ;;  %1202 = vpow2.f32 %v1118_v61  ;;  %v581_v36 = vand.u32 2147483648, %v1484_v63  ;;  %vm560_vm2 = vweird.f32 %v1479_v59  ;;  %vm1532_vm3 = vcmp.eq.f32.partialorder %v549_v25, 8.507059e+37 }
 0x12b   : > { %v504_v3 = vadd.f32 %v1470_v41, %v486_v1  ;;  %1204 = vrcp.f32 %v1484_v63  ;;  %v552_v38 = vor.u32 1.1754944e-38, %v551_v2  ;;  %v579_v39 = vand.u32 2147483647, %v1484_v63 }
 0x12c   : > { %1206 = vpow2.f32 %v1119_v0  ;;  %vm1537_vm4 = vcmp.eq.f32.partialorder %v564_v28, 8.507059e+37  ;;  %v567_v26 = vor.u32 1.1754944e-38, %v566_v31  ;;  %vm575_vm7 = vweird.f32 %v1484_v63 }
 0x12d   : > { %v1197_v4 = vpop.eup %1196  ;;  %v1117_v5 = vmul.f32 -1.442695, %v504_v3  ;;  %v582_v48 = vor.u32 1.1754944e-38, %v581_v36  ;;  %vm1561_vm9 = vcmp.eq.f32.partialorder %v579_v39, 8.507059e+37 }
 0x12e   : > { %v1488_v7 = vpop.eup %1198  ;;  %v1490_v8 = vadd.f32 1.0, %v1197_v4 }
 0x12f   : > { %v1492_v9 = vpop.eup %1200  ;;  %v541_v10 = vmul.f32 %v1488_v7, %v1477_v57  ;;  %1208 = vpow2.f32 %v1117_v5  ;;  %vm546_vm5 = vweird.f32 %v1488_v7 }
 0x130   : > { %v556_v11 = vmul.f32 %v1492_v9, %v1479_v59  ;;  %1210 = vrcp.f32 %v1490_v8  ;;  %v1203_v12 = vpop.eup %1202  ;;  %vm561_vm6 = vweird.f32 %v1492_v9  ;;  %v594_v50 = vand.u32 2147483647, %v1490_v8  ;;  %vm1557_vm8 = vmor %vm545_vm1, %vm546_vm5 }
 0x131   : > { %v1502_v14 = vpop.eup %1204  ;;  %v542_v15 = vsub.f32 1.0, %v541_v10  ;;  %v1504_v16 = vadd.f32 1.0, %v1203_v12  ;;  %v596_v53 = vand.u32 2147483648, %v1490_v8  ;;  %vm1575_vm11 = vmor %vm560_vm2, %vm561_vm6  ;;  %vm590_vm12 = vweird.f32 %v1490_v8 }
 0x132   : > { %v1207_v17 = vpop.eup %1206  ;;  %v571_v18 = vmul.f32 %v1502_v14, %v1484_v63  ;;  %v557_v20 = vsub.f32 1.0, %v556_v11  ;;  %v495_v23 = vpop.xlane.xlu2 %494  ;;  %vm576_vm10 = vweird.f32 %v1502_v14  ;;  %vm1597_vm15 = vcmp.eq.f32.partialorder %v594_v50, 8.507059e+37 }
 0x133   : > { %v1508_v21 = vadd.f32 1.0, %v1207_v17  ;;  %1212 = vrcp.f32 %v1504_v16  ;;  %v543_v30 = vmul.f32 %v1488_v7, %v542_v15  ;;  %v507_v19 = vadd.f32 %v1470_v41, %v495_v23  ;;  %vm1609_vm5 = vmor %vm575_vm7, %vm576_vm10 }
 0x134   : > { %v572_v33 = vsub.f32 1.0, %v571_v18  ;;  %v558_v34 = vmul.f32 %v1492_v9, %v557_v20  ;;  %vm950_vm1 = vcmask 130112   ;;  %v597_v5 = vor.u32 1.1754944e-38, %v596_v53 }
 0x135   : > { %v1209_v24 = vpop.eup %1208  ;;  %1214 = vrcp.f32 %v1508_v21  ;;  %v544_v42 = vadd.f32 %v1488_v7, %v543_v30  ;;  %v1120_v46 = vmul.f32 -1.442695, %v507_v19  ;;  %vm620_vm2 = vweird.f32 %v1504_v16 }
 0x136   : > { %v1517_v29 = vpop.eup %1210  ;;  %v1522_v32 = vadd.f32 1.0, %v1209_v24  ;;  %v573_v43 = vmul.f32 %v1502_v14, %v572_v33  ;;  %v559_v44 = vadd.f32 %v1492_v9, %v558_v34  ;;  %v626_v15 = vand.u32 2147483648, %v1504_v16 }
 0x137   : > { %v586_v35 = vmul.f32 %v1517_v29, %v1490_v8  ;;  %v548_v61 = vsel %vm1557_vm8, %v1488_v7, %v544_v42  ;;  %vm591_vm14 = vweird.f32 %v1517_v29  ;;  %vm680_vm6 = vcmask 1042434  }
 0x138   : > { %1216 = vrcp.f32 %v1522_v32  ;;  %v574_v62 = vadd.f32 %v1502_v14, %v573_v43  ;;  %v563_v59 = vsel %vm1575_vm11, %v1492_v9, %v559_v44  ;;  %v553_v10 = vsel %vm1532_vm3, %v552_v38, %v548_v61  ;;  %vm1624_vm3 = vmor %vm590_vm12, %vm591_vm14 }
 0x139   : > { %v587_v40 = vsub.f32 1.0, %v586_v35  ;;  %v1541_v41 = vpop.eup %1212  ;;  %1218 = vpow2.f32 %v1120_v46  ;;  %v568_v12 = vsel %vm1537_vm4, %v567_v26, %v563_v59  ;;  %v609_v17 = vand.u32 2147483647, %v1522_v32 }
 0x13a   : > { %v616_v45 = vmul.f32 %v1541_v41, %v1504_v16  ;;  %v578_v20 = vsel %vm1609_vm5, %v1502_v14, %v574_v62  ;;  %v611_v24 = vand.u32 2147483648, %v1522_v32  ;;  %vm621_vm4 = vweird.f32 %v1541_v41 }
 0x13b   : > { %v1550_v47 = vpop.eup %1214  ;;  %v588_v49 = vmul.f32 %v1517_v29, %v587_v40  ;;  %vm682_vm7 = vcmask 1043459   ;;  %v670_v2 = vperm.slane %v553_v10, %v1500_v13  ;;  %vm605_vm10 = vweird.f32 %v1522_v32  ;;  %vm1648_vm12 = vmor %vm620_vm2, %vm621_vm4 }
 0x13c   : > { %v631_v54 = vmul.f32 %v1550_v47, %v1508_v21  ;;  %v617_v55 = vsub.f32 1.0, %v616_v45  ;;  %vm954_vm11 = vcmask 195712   ;;  %v671_v31 = vperm.slane %v568_v12, %v1500_v13 }
 0x13d   : > { %v589_v1 = vadd.f32 %v1517_v29, %v588_v49  ;;  %v583_v33 = vsel %vm1561_vm9, %v582_v48, %v578_v20  ;;  %v624_v34 = vand.u32 2147483647, %v1504_v16  ;;  %v612_v19 = vor.u32 1.1754944e-38, %v611_v24  ;;  %v811_v48 = vld [vmem:[%s1840_s3 + $0x50] sm:$0xff] }
 0x13e   : > { %v1568_v56 = vpop.eup %1216  ;;  %v618_v4 = vmul.f32 %v1541_v41, %v617_v55  ;;  %v632_v7 = vsub.f32 1.0, %v631_v54  ;;  %vm610_vm9 = vcmp.eq.f32.partialorder %v609_v17, 8.507059e+37  ;;  %v641_v38 = vand.u32 2147483648, %v1508_v21 }
 0x13f   : > { %v601_v0 = vmul.f32 %v1568_v56, %v1522_v32  ;;  %v1219_v18 = vpop.eup %1218  ;;  %vm606_vm8 = vweird.f32 %v1568_v56  ;;  %v593_v14 = vsel %vm1624_vm3, %v1517_v29, %v589_v1  ;;  %v949_v32 = vperm.slane %v568_v12, %v1514_v27 }
 0x140   : > { %v1632_v25 = vadd.f32 1.0, %v1219_v18  ;;  %v619_v8 = vadd.f32 %v1541_v41, %v618_v4  ;;  %v633_v30 = vmul.f32 %v1550_v47, %v632_v7  ;;  %vm1656_vm14 = vmor %vm605_vm10, %vm606_vm8  ;;  %v598_v36 = vsel %vm1597_vm15, %v597_v5, %v593_v14 }
 0x141   : > { %v602_v9 = vsub.f32 1.0, %v601_v0  ;;  %v639_v27 = vand.u32 2147483647, %v1508_v21  ;;  %v627_v39 = vor.u32 1.1754944e-38, %v626_v15  ;;  %vm636_vm2 = vweird.f32 %v1550_v47 }
 0x142   : > { %1220 = vrcp.f32 %v1632_v25  ;;  %v623_v16 = vsel %vm1648_vm12, %v1541_v41, %v619_v8  ;;  %v634_v22 = vadd.f32 %v1550_v47, %v633_v30  ;;  %v672_v40 = vperm.slane %v583_v33, %v1500_v13  ;;  %v291_v30 = vld [vmem:[%s278_s13] sm:$0xff]  ;;  %s1001_s13 = sshll.u32 %s997_s9, 4  ;;  %s1002_s13 = int_to_ptr.hbm [resolvable:$true] %s1001_s13 }
 0x143   : > { %v603_v23 = vmul.f32 %v1568_v56, %v602_v9  ;;  %vm625_vm15 = vcmp.eq.f32.partialorder %v624_v34, 8.507059e+37  ;;  %v673_v42 = vperm.slane %v598_v36, %v1500_v13  ;;  %v679_v26 = vsel %vm678_vm13, %v671_v31, %v670_v2  ;;  %s1242_s18 = sshra.s32 %s1002_s13, 4  ;;  %s1243_s18 = int_to_ptr.hbm [resolvable:$true] %s1242_s18 }
 0x144   : > { %v960_v43 = vadd.s32 4294967264, %v1500_v13  ;;  %v628_v41 = vsel %vm625_vm15, %v627_v39, %v623_v16  ;;  %vm635_vm5 = vweird.f32 %v1508_v21  ;;  %vm958_vm3 = vcmask 261312   ;;  %s1244_s14 = scalar_lea.hbm %s1243_s18, 8  ;;  %p1249_p0 = scmp.lt.s32.totalorder %s1243_s18, %s1843_s6 }
 0x145   : > { %v604_v28 = vadd.f32 %v1568_v56, %v603_v23  ;;  %v951_v46 = vsel %vm950_vm1, %v949_v32, %v670_v2  ;;  %vm1678_vm4 = vmor %vm635_vm5, %vm636_vm2  ;;  %vm640_vm8 = vcmp.eq.f32.partialorder %v639_v27, 8.507059e+37  ;;  %v642_v49 = vor.u32 1.1754944e-38, %v641_v38  ;;  %p1245_p11 = scmp.ne.s32.totalorder %s1243_s18, %s1244_s14  ;;  %p1250_p1 = scmp.lt.s32.totalorder %s1248_s17, %s1244_s14 }
 0x146   : > { %v953_v50 = vperm.slane %v583_v33, %v1581_v58  ;;  %v638_v52 = vsel %vm1678_vm4, %v1550_v47, %v634_v22  ;;  %v681_v21 = vsel %vm680_vm6, %v672_v40, %v679_v26  ;;  %v957_v53 = vperm.slane %v598_v36, %v1584_v60 }
 0x147   : > { %v608_v37 = vsel %vm1656_vm14, %v1568_v56, %v604_v28  ;;  %v675_v55 = vperm.slane %v628_v41, %v1500_v13  ;;  %v683_v56 = vsel %vm682_vm7, %v673_v42, %v681_v21  ;;  %vm684_vm13 = vcmask 1044484   ;;  %v814_v21 = vld [vmem:[%s1840_s3 + $0x68] sm:$0xff]  ;;  %p1246_p12 = pnand %p1245_p11, %p1366_p5  ;;  %p1251_p2 = por %p1250_p1, %p1249_p0 }
 0x148   : > { %v613_v44 = vsel %vm610_vm9, %v612_v19, %v608_v37  ;;  %v1221_v45 = vpop.eup %1220  ;;  %vm962_vm1 = vcmask 326912   ;;  %v964_v58 = vadd.s32 4294967256, %v1500_v13  ;;  %v643_v62 = vsel %vm640_vm8, %v642_v49, %v638_v52  ;;  %v807_v49 = vld [vmem:[%s1840_s3 + $0x30] sm:$0xff]  ;;  %v806_v52 = vld [vmem:[%s1840_s3 + $0x28] sm:$0xff] }
 0x149   : > { %v646_v51 = vmul.f32 %v1221_v45, %v1632_v25  ;;  %v674_v54 = vperm.slane %v613_v44, %v1500_v13  ;;  %v961_v57 = vperm.slane %v613_v44, %v960_v43  ;;  %v654_v59 = vand.u32 2147483647, %v1632_v25  ;;  %p1247_p13 = pneg %p1246_p12 }
 0x14a   : > { %v656_v47 = vand.u32 2147483648, %v1632_v25  ;;  %v955_v0 = vsel %vm954_vm11, %v953_v50, %v951_v46  ;;  %vm651_vm6 = vweird.f32 %v1221_v45  ;;  %vm686_vm10 = vcmask 1045509   ;;  %v816_v46 = vld [vmem:[%s1840_s3 + $0x78] sm:$0xff]  ;;  %v815_v50 = vld [vmem:[%s1840_s3 + $0x70] sm:$0xff] }
 0x14b   : > { %v647_v61 = vsub.f32 1.0, %v646_v51  ;;  %v959_v1 = vsel %vm958_vm3, %v957_v53, %v955_v0  ;;  %v685_v3 = vsel %vm684_vm13, %v674_v54, %v683_v56  ;;  %vm966_vm7 = vcmask 392512   ;;  %878 = vmatpush.msrb.mxu1 %v816_v46  ;;  %v810_v51 = vld [vmem:[%s1840_s3 + $0x48] sm:$0xff]  ;;  %v809_v54 = vld [vmem:[%s1840_s3 + $0x40] sm:$0xff]  ;;  %p1252_p3 = pnand %p1251_p2, %p1247_p13 }
 0x14c   : > { %v963_v4 = vsel %vm962_vm1, %v961_v57, %v959_v1  ;;  %v968_v5 = vadd.s32 4294967248, %v1500_v13  ;;  %vm650_vm12 = vweird.f32 %v1632_v25  ;;  %v965_v9 = vperm.slane %v628_v41, %v964_v58  ;;  %v812_v41 = vld [vmem:[%s1840_s3 + $0x58] sm:$0xff]  ;;  %v813_v56 = vld [vmem:[%s1840_s3 + $0x60] sm:$0xff] }
 0x14d   : > { %v648_v60 = vmul.f32 %v1221_v45, %v647_v61  ;;  %v972_v10 = vadd.s32 4294967240, %v1500_v13  ;;  %vm652_vm14 = vmor %vm650_vm12, %vm651_vm6  ;;  %vm655_vm9 = vcmp.eq.f32.partialorder %v654_v59, 8.507059e+37  ;;  %v657_v11 = vor.u32 1.1754944e-38, %v656_v47  ;;  %832 = vmatpush.msra.mxu2 %v812_v41  ;;  %879 = vmatpush.msrb.mxu1 %v815_v50 }
 0x14e   : > { %v676_v12 = vperm.slane %v643_v62, %v1500_v13  ;;  %vm688_vm11 = vcmask 1046534   ;;  %v687_v17 = vsel %vm686_vm10, %v675_v55, %v685_v3  ;;  %v967_v18 = vsel %vm966_vm7, %v965_v9, %v963_v4  ;;  %v805_v55 = vld [vmem:[%s1840_s3 + $0x20] sm:$0xff]  ;;  %v1184_v9 = vld [vmem:[%s1841_s4 + $0xa] ss:$0 sm:$0xff] }
 0x14f   : > { %v649_v7 = vadd.f32 %v1221_v45, %v648_v60  ;;  %vm970_vm2 = vcmask 458112   ;;  %vm690_vm15 = vcmask 1047559   ;;  %v969_v63 = vperm.slane %v643_v62, %v968_v5  ;;  %833 = vmatpush.msra.mxu2 %v811_v48  ;;  %880 = vmatpush.msrb.mxu1 %v814_v21  ;;  %v1180_v5 = vld [vmem:[%s1841_s4 + $0x9] ss:$0 sm:$0xff] }
 0x150   : > { %vm974_vm5 = vcmask 523712   ;;  %vm977_vm3 = vcmask 516096   ;;  %v689_v25 = vsel %vm688_vm11, %v676_v12, %v687_v17  ;;  %v752_v28 = vsel %vm316_vm0, %v1404_v6, 0.0  ;;  %v1181_v12 = vld [vmem:[%s1841_s4 + $0xc] ss:$0 sm:$0xff] }
 0x151   : > { %v653_v15 = vsel %vm652_vm14, %v1221_v45, %v649_v7  ;;  %v971_v14 = vsel %vm970_vm2, %v969_v63, %v967_v18  ;;  %753 = vadd.xlane.f32.xlu2 %v752_v28  ;;  %v749_v31 = vsel %vm316_vm0, %v291_v30, 0.0  ;;  %vm725_vm4 = vcmask 64512   ;;  %v808_v45 = vld [vmem:[%s1840_s3 + $0x38] sm:$0xff]  ;;  %834 = vmatpush.msra.mxu2 %v810_v51  ;;  %v1182_v7 = vld [vmem:[%s1841_s4 + $0x8] ss:$0 sm:$0xff]  ;;  %v298_v28 = vld [vmem:[%s1840_s3 + $0x90] sm:$0xff] }
 0x152   : > { %v658_v20 = vsel %vm655_vm9, %v657_v11, %v653_v15  ;;  %750 = vadd.xlane.f32.xlu1 %v749_v31  ;;  %855 = vmatpush.msra.mxu3 %v808_v45  ;;  %v1183_v17 = vld [vmem:[%s1841_s4 + $0xb] ss:$0 sm:$0xff]  ;;  %v296_v31 = vld [vmem:[%s1840_s3 + $0x80] sm:$0xff] }
 0x153   : > { %v677_v23 = vperm.slane %v658_v20, %v1500_v13  ;;  %v973_v24 = vperm.slane %v658_v20, %v972_v10  ;;  %835 = vmatpush.msra.mxu2 %v809_v54  ;;  %881 = vmatpush.msrb.mxu1 %v813_v56  ;;  %v1185_v20 = vld [vmem:[%s1841_s4 + $0xd] ss:$0 sm:$0xff] }
 0x154   : > { %856 = vmatpush.msra.mxu3 %v807_v49 }
 0x155   : > { %v691_v8 = vsel %vm690_vm15, %v677_v23, %v689_v25  ;;  %v975_v2 = vsel %vm974_vm5, %v973_v24, %v971_v14 }
 0x156   : > { %978 = vst.msk [vmem:[%s289_s10] sm:$0x1] %vm977_vm3, %v975_v2  ;;  %693 = vxpose.xlu0.b32.start.end [1/1] (short) (narrow) %v691_v8, 8  ;;  %857 = vmatpush.msra.mxu3 %v806_v52  ;;  %v299_v2 = vld [vmem:[%s1840_s3 + $0x98] sm:$0xff] }
 0x157   : > { %906 = vmatpush.msrb.mxu0 %v299_v2 }
 0x158   : > { %858 = vmatpush.msra.mxu3 %v805_v55 }
 0x159   : > { %907 = vmatpush.msrb.mxu0 %v298_v28 }
 0x1c4   : > { %v754_v32 = vpop.xlane.xlu2 %753 }
 0x1c5   : > { %v751_v34 = vpop.xlane.xlu1 %750 }
 0x1c6   : > { %v755_v35 = vadd.f32 %v754_v32, %v751_v34  ;;  %v1186_v34 = vld [vmem:[%s1841_s4 + $0x4] ss:$0 sm:$0xff] }
 0x1fa   : > { %v709_v13 = vpop.trf.xlu0 }
 0x1fb   : > { %1121 = vmatmul.msk.f32.vlgmr.msra.gmra.mxu1 %vm725_vm4, %v709_v13 }
 0x278   : > { %v746_v33 = vpop.f32.mrf.mxu1 }
 0x279   : > { %v756_v29 = vsel %vm316_vm0, %v746_v33, 0.0 }
 0x27a   : > { %757 = vadd.xlane.f32.xlu1 %v756_v29 }
 0x2ed   : > { %v758_v19 = vpop.xlane.xlu1 %757 }
 0x2ee   : > { %v759_v36 = vadd.f32 %v758_v19, %v755_v35 }
 0x2f0   : > { %v760_v37 = vmul.f32 0.010416667, %v759_v36 }
 0x2f2   : > { %v762_v16 = vsub.f32 %v1404_v6, %v760_v37  ;;  %v761_v27 = vsub.f32 %v291_v30, %v760_v37  ;;  %v763_v42 = vsub.f32 %v746_v33, %v760_v37  ;;  %v297_v30 = vld [vmem:[%s1840_s3 + $0x88] sm:$0xff]  ;;  %v1187_v37 = vld [vmem:[%s1841_s4 + $0x5] ss:$0 sm:$0xff] }
 0x2f3   : > { %908 = vmatpush.msrb.mxu0 %v297_v30 }
 0x2f4   : > { %v768_v38 = vmul.f32 %v762_v16, %v762_v16  ;;  %v764_v39 = vmul.f32 %v761_v27, %v761_v27  ;;  %v773_v26 = vmul.f32 %v763_v42, %v763_v42 }
 0x2f5   : > { %909 = vmatpush.msrb.mxu0 %v296_v31 }
 0x2f6   : > { %v769_v22 = vsel %vm316_vm0, %v768_v38, 0.0  ;;  %v765_v40 = vsel %vm316_vm0, %v764_v39, 0.0  ;;  %v774_v43 = vsel %vm316_vm0, %v773_v26, 0.0 }
 0x2f7   : > { %770 = vadd.xlane.f32.xlu1 %v769_v22  ;;  %766 = vadd.xlane.f32.xlu2 %v765_v40  ;;  %v1292_v22 = vmov 32.0  }
 0x2ff   : > { %775 = vadd.xlane.f32.xlu2 %v774_v43 }
 0x36a   : > { %v767_v44 = vpop.xlane.xlu2 %766  ;;  %v771_v53 = vpop.xlane.xlu1 %770 }
 0x36b   : > { %v772_v57 = vadd.f32 %v771_v53, %v767_v44 }
 0x372   : > { %v776_v61 = vpop.xlane.xlu2 %775 }
 0x373   : > { %v777_v58 = vadd.f32 %v776_v61, %v772_v57  ;;  %v1188_v61 = vld [vmem:[%s1841_s4 + $0x6] ss:$0 sm:$0xff] }
 0x375   : > { %v778_v62 = vmul.f32 0.010416667, %v777_v58 }
 0x377   : > { %v779_v59 = vadd.f32 1e-05, %v778_v62 }
 0x379   : > { %1222 = vrsqrt.f32 %v779_v59  ;;  %vm786_vm13 = vweird.f32 %v779_v59 }
 0x37a   : > { %1224 = vrcp.f32 %v1292_v22 }
 0x37f   : > { %v1223_v47 = vpop.eup %1222 }
 0x380   : > { %v781_v0 = vmul.f32 %v1223_v47, %v779_v59  ;;  %vm787_vm8 = vweird.f32 %v1223_v47  ;;  %v1225_v40 = vpop.eup %1224  ;;  %v1189_v59 = vld [vmem:[%s1841_s4 + $0x7] ss:$0 sm:$0xff] }
 0x381   : > { %vm788_vm1 = vmor %vm786_vm13, %vm787_vm8  ;;  %vm923_vm6 = vweird.f32 %v1225_v40 }
 0x382   : > { %v782_v60 = vmul.f32 %v1223_v47, %v781_v0 }
 0x384   : > { %v783_v1 = vmul.f32 0.5, %v782_v60 }
 0x386   : > { %v784_v3 = vsub.f32 1.5, %v783_v1 }
 0x388   : > { %v785_v4 = vmul.f32 %v1223_v47, %v784_v3 }
 0x38a   : > { %v789_v10 = vsel %vm788_vm1, %v1223_v47, %v785_v4 }
 0x38b   : > { %v795_v11 = vmul.f32 %v789_v10, %v762_v16  ;;  %v790_v15 = vmul.f32 %v789_v10, %v761_v27  ;;  %v800_v18 = vmul.f32 %v789_v10, %v763_v42  ;;  %v919_v42 = vmul.f32 32.0, %v1225_v40 }
 0x38d   : > { %v797_v63 = vmul.f32 %v1180_v5, %v795_v11  ;;  %v792_v23 = vmul.f32 %v1182_v7, %v790_v15  ;;  %v802_v24 = vmul.f32 %v1184_v9, %v800_v18  ;;  %v920_v26 = vsub.f32 1.0, %v919_v42 }
 0x38f   : > { %v799_v25 = vadd.f32 %v1181_v12, %v797_v63  ;;  %v794_v14 = vadd.f32 %v1183_v17, %v792_v23  ;;  %v804_v8 = vadd.f32 %v1185_v20, %v802_v24  ;;  %v921_v43 = vmul.f32 %v1225_v40, %v920_v26 }
 0x391   : > { %1122 = vmatmul.msk.f32.vlgmr.msra.gmra.mxu2 %vm316_vm0, %v799_v25  ;;  %1123 = vmatmul.msk.f32.vlgmr.msra.gmra.mxu3 %vm316_vm0, %v794_v14  ;;  %v922_v44 = vadd.f32 %v1225_v40, %v921_v43 }
 0x392   : > { %1124 = vmatmul.msk.f32.vlgmr.msrb.gmra.mxu1 %vm316_vm0, %v804_v8 }
 0x393   : > { %v924_v41 = vsel %vm923_vm6, %v1225_v40, %v922_v44 }
 0x40f   : > { %v883_v32 = vpop.f32.mrf.mxu1 }
 0x414   : > { %v837_v13 = vpop.f32.mrf.mxu2  ;;  %v860_v33 = vpop.f32.mrf.mxu3 }
 0x415   : > { %v861_v29 = vadd.f32 %v860_v33, %v837_v13 }
 0x417   : > { %v886_v35 = vadd.f32 %v883_v32, %v861_v29 }
 0x419   : > { %v888_v19 = vadd.f32 %v1186_v34, %v886_v35 }
 0x41b   : > { %v889_v36 = vmax.f32 %v888_v19, 0.0 }
 0x41d   : > { %1125 = vmatmul.msk.f32.vlgmr.msrb.gmra.mxu0 %vm316_vm0, %v889_v36 }
 0x49a   : > { %v911_v16 = vpop.f32.mrf.mxu0 }
 0x49b   : > { %v912_v27 = vadd.f32 %v1187_v37, %v911_v16 }
 0x49d   : > { %v914_v38 = vadd.f32 %v912_v27, %v1404_v6 }
 0x49f   : > { %v915_v39 = vsel %vm316_vm0, %v914_v38, 0.0 }
 0x4a0   : > { %916 = vadd.xlane.f32.xlu1 %v915_v39 }
 0x513   : > { %v917_v45 = vpop.xlane.xlu1 %916 }
 0x514   : > { %v925_v46 = vmul.f32 %v924_v41, %v917_v45 }
 0x516   : > { %v926_v48 = vsub.f32 %v914_v38, %v925_v46 }
 0x518   : > { %v927_v49 = vmul.f32 %v926_v48, %v926_v48 }
 0x51a   : > { %v928_v6 = vsel %vm316_vm0, %v927_v49, 0.0 }
 0x51b   : > { %929 = vadd.xlane.f32.xlu2 %v928_v6 }
 0x58e   : > { %v930_v50 = vpop.xlane.xlu2 %929 }
 0x58f   : > { %v931_v51 = vmul.f32 %v930_v50, %v924_v41 }
 0x591   : > { %v932_v52 = vadd.f32 1e-05, %v931_v51 }
 0x593   : > { %1226 = vrsqrt.f32 %v932_v52  ;;  %vm939_vm7 = vweird.f32 %v932_v52 }
 0x599   : > { %v1227_v21 = vpop.eup %1226 }
 0x59a   : > { %v934_v53 = vmul.f32 %v1227_v21, %v932_v52  ;;  %vm940_vm10 = vweird.f32 %v1227_v21 }
 0x59b   : > { %vm941_vm12 = vmor %vm939_vm7, %vm940_vm10 }
 0x59c   : > { %v935_v54 = vmul.f32 %v1227_v21, %v934_v53 }
 0x59e   : > { %v936_v55 = vmul.f32 0.5, %v935_v54 }
 0x5a0   : > { %v937_v56 = vsub.f32 1.5, %v936_v55 }
 0x5a2   : > { %v938_v57 = vmul.f32 %v1227_v21, %v937_v56 }
 0x5a4   : > { %v942_v58 = vsel %vm941_vm12, %v1227_v21, %v938_v57 }
 0x5a5   : > { %v943_v62 = vmul.f32 %v942_v58, %v926_v48 }
 0x5a7   : > { %v945_v47 = vmul.f32 %v1188_v61, %v943_v62 }
 0x5a9   : > { %v947_v0 = vadd.f32 %v1189_v59, %v945_v47 }
 0x5ab   : > { %979 = vst.msk [vmem:[%s274_s12] sm:$0xff] %vm316_vm0, %v947_v0 }
 0x5ac   : > { %1255 = shalt.err (!%p1252_p3)
}
 0x5ad   : > { %1132 = dma.vmem_to_hbm [thread:$0]  (%p1366_p5), %s1000_s25, 128, %s1002_s13, %s984_s15  }
 0x5ae PF: > { %p1138_p4 = scmp.ge.s32.totalorder %s1290_s24, 2  ;;  %s1019_s16 = sand.u32 1, %s1278_s21  }
 0x5af   : > { %s1020_s29 = scalar_lea.sflag [#allocation3], %s1019_s16 }
 0x5b0   : > { %p1135_p7 = pnand %p1138_p4, %p1370_p6 }
 0x5b2   : > { %p1136_p8 = pneg %p1135_p7 }
 0x5b4   : > { %1273 = dma.done.wait (%p1136_p8), %s1020_s29, 128  }
 0x5b5   : > { %1275 = vsyncadd (%p1136_p8), %s1020_s29, 4294967168  ;;  %p17_p9 = scmp.ge.s32.totalorder %s1353_s27, 4   ;;  %s1868_s21 = smov %s1282_s22 }
 0x5b6   : > { %s1869_s22 = smov %s1286_s23  ;;  %s1870_s23 = smov %s1364_s30 }
 0x5b7   : > { %s1871_s24 = smov %s1353_s27  ;;  %19 = sbr.rel (!%p17_p9) target bundleno = 3 (0x3), region = 93 }
 0x5bc   :  { %1026 = vsyncpa [#allocation3], 1 }
 0x5bd   :  { %1028 = vsyncpa [#allocation3 + $0x1], 1 }

</bundles_post_ra>
